<compile_context>
chip_gen: v7x
topology: tpu7x:2x2x1
jax: 0.10.0
libtpu: 0.0.40
codegen_flags: <defaults>
</compile_context>

<pallas_src>
import math
from functools import partial

import jax
import jax.numpy as jnp
from jax.experimental import pallas as pl
from jax.experimental.pallas import tpu as pltpu


def _round_up(n, m):
    return ((n + m - 1) // m) * m


def _lora_kernel(x_ref, a_ref, b_ref, o_ref, *, scaling):
    # x_ref: (TM, IN), a_ref: (IN, r), b_ref: (r, OUT), o_ref: (TM, OUT)
    xa = jnp.dot(x_ref[...], a_ref[...], preferred_element_type=jnp.float32)
    out = jnp.dot(xa.astype(b_ref.dtype), b_ref[...],
                  preferred_element_type=jnp.float32)
    o_ref[...] = (out * scaling).astype(o_ref.dtype)


def _lora_dropout_kernel(x_ref, m_ref, a_ref, b_ref, o_ref, *, scaling):
    # m_ref holds the 0/1 keep mask in x's dtype; the 1/(1-p) inverted-dropout
    # scale is folded into `scaling` (applied on the much smaller (TM, OUT)).
    x = x_ref[...] * m_ref[...]
    xa = jnp.dot(x, a_ref[...], preferred_element_type=jnp.float32)
    out = jnp.dot(xa.astype(b_ref.dtype), b_ref[...],
                  preferred_element_type=jnp.float32)
    o_ref[...] = (out * scaling).astype(o_ref.dtype)


def lora_linear(x, lora_A, lora_B, *, alpha=32, dropout_p=0.1,
                training=False, rng_key=None, block_m=128):
    """Pallas LoRA forward.  x: (..., in_features); returns (..., out_features)."""
    r, in_features = lora_A.shape
    out_features, r_b = lora_B.shape
    assert r == r_b
    scaling = alpha / r

    lead_shape = x.shape[:-1]
    M = int(math.prod(lead_shape)) if lead_shape else 1
    x2 = x.reshape(M, in_features)
    dtype = x2.dtype
    itemsize = jnp.dtype(dtype).itemsize

    # One-time adapter transposes (MXU-friendly layouts, no per-step XLU work).
    a_t = jnp.asarray(lora_A).T  # (IN, r)
    b_t = jnp.asarray(lora_B).T  # (r, OUT)

    # Tile the M axis.  Clamp to the (sublane-rounded) problem size so small
    # inputs don't over-pad, keep multiples of 8 for the (8,128) layout rule.
    block_m = max(8, _round_up(block_m, 8))
    block_m = min(block_m, _round_up(M, 8))
    m_pad = _round_up(M, block_m)
    if m_pad != M:
        x2 = jnp.pad(x2, ((0, m_pad - M), (0, 0)))
    grid = (m_pad // block_m,)

    use_dropout = training and dropout_p > 0.0
    if use_dropout:
        if rng_key is None:
            rng_key = jax.random.PRNGKey(0)
        keep = jax.random.bernoulli(rng_key, 1.0 - dropout_p, (M, in_features))
        mask = keep.astype(dtype)
        if m_pad != M:
            mask = jnp.pad(mask, ((0, m_pad - M), (0, 0)))
        scaling = scaling / (1.0 - dropout_p)  # fold inverted-dropout scale

    x_spec = pl.BlockSpec((block_m, in_features), lambda i: (i, 0))
    a_spec = pl.BlockSpec((in_features, r), lambda i: (0, 0))
    b_spec = pl.BlockSpec((r, out_features), lambda i: (0, 0))
    o_spec = pl.BlockSpec((block_m, out_features), lambda i: (i, 0))

    if use_dropout:
        kernel = partial(_lora_dropout_kernel, scaling=float(scaling))
        in_specs = [x_spec, x_spec, a_spec, b_spec]
        operands = (x2, mask, a_t, b_t)
    else:
        kernel = partial(_lora_kernel, scaling=float(scaling))
        in_specs = [x_spec, a_spec, b_spec]
        operands = (x2, a_t, b_t)

    # VMEM budget: double-buffered x (+mask) and output tiles + resident A/B.
    tile_bytes = block_m * (in_features * (2 if use_dropout else 1)
                            + out_features) * itemsize
    ab_bytes = (in_features * r + r * out_features) * jnp.dtype(a_t.dtype).itemsize
    vmem_limit = int(min(max(32 * 1024 * 1024, 2 * (tile_bytes + ab_bytes) * 2),
                         56 * 1024 * 1024))  # headroom under v7x's 64 MiB

    flops = 2 * m_pad * r * (in_features + out_features)
    bytes_accessed = (m_pad * (in_features * (2 if use_dropout else 1)
                               + out_features) * itemsize + ab_bytes)

    out = pl.pallas_call(
        kernel,
        out_shape=jax.ShapeDtypeStruct((m_pad, out_features), dtype),
        grid=grid,
        in_specs=in_specs,
        out_specs=o_spec,
        compiler_params=pltpu.CompilerParams(
            dimension_semantics=("parallel",),   # M tiles are independent
            vmem_limit_bytes=vmem_limit),
        cost_estimate=pl.CostEstimate(flops=flops, transcendentals=0,
                                      bytes_accessed=bytes_accessed),
    )(*operands)

    if m_pad != M:
        out = out[:M]
    return out.reshape(*lead_shape, out_features)


if __name__ == "__main__":
    key = jax.random.PRNGKey(0)
    k1, k2, k3, k4 = jax.random.split(key, 4)

    batch, seq = 2, 8
    in_features, out_features, r, alpha, p = 32, 16, 8, 32, 0.1

    # kaiming_uniform_(a=sqrt(5)) on (r, in_features) => U(-1/sqrt(in), 1/sqrt(in))
    bound = 1.0 / math.sqrt(in_features)
    lora_A = jax.random.uniform(k1, (r, in_features), jnp.float32, -bound, bound)
    # NOTE: the PyTorch module inits lora_B to zeros (forward would be all-zero);
    # use small random values so the kernel math is actually exercised.
    lora_B = jax.random.uniform(k2, (out_features, r), jnp.float32, -0.1, 0.1)

    x = jax.random.normal(k3, (batch, seq, in_features), jnp.float32)

    # Eval mode (dropout = identity): deterministic, check against JAX reference.
    out = jax.block_until_ready(
        lora_linear(x, lora_A, lora_B, alpha=alpha, dropout_p=p, training=False))
    ref = (x.reshape(-1, in_features) @ (lora_B @ lora_A).T * (alpha / r)
           ).reshape(batch, seq, out_features)
    assert out.shape == ref.shape
    assert jnp.allclose(out, ref, atol=1e-4, rtol=1e-4), "eval mismatch vs reference"

    # Training mode: the wrapper builds its dropout mask from k4; rebuild the
    # same mask here and compare against a pure-JAX reference exactly.
    out_tr = jax.block_until_ready(
        lora_linear(x, lora_A, lora_B, alpha=alpha, dropout_p=p,
                    training=True, rng_key=k4))
    keep = jax.random.bernoulli(k4, 1.0 - p, (batch * seq, in_features))
    x_drop = jnp.where(keep, x.reshape(-1, in_features), 0.0) / (1.0 - p)
    ref_tr = (x_drop @ (lora_B @ lora_A).T * (alpha / r)
              ).reshape(batch, seq, out_features)
    assert out_tr.shape == ref_tr.shape
    assert jnp.allclose(out_tr, ref_tr, atol=1e-4, rtol=1e-4), "train mismatch"
    assert bool(jnp.all(jnp.isfinite(out_tr)))

    print("KERNEL_OK")
</pallas_src>

<mosaic_0001>
module attributes {stable_mosaic.version = 11 : i64} {
  func.func @_lora_kernel(%arg0: i32, %arg1: memref<16x32xf32, #tpu.memory_space<vmem>>, %arg2: memref<32x8xf32, #tpu.memory_space<vmem>>, %arg3: memref<8x16xf32, #tpu.memory_space<vmem>>, %arg4: memref<16x16xf32, #tpu.memory_space<vmem>>) attributes {dimension_semantics = [#tpu.dimension_semantics<parallel>], iteration_bounds = array<i64: 1>, scalar_prefetch = 0 : i64, scratch_operands = 0 : i64, tpu.core_type = #tpu.core_type<tc>, window_params = [{transform_indices = @transform_0, window_bounds = array<i64: 16, 32>}, {pipeline_mode = #tpu.pipeline_mode<synchronous>, transform_indices = @transform_1, window_bounds = array<i64: 32, 8>}, {pipeline_mode = #tpu.pipeline_mode<synchronous>, transform_indices = @transform_2, window_bounds = array<i64: 8, 16>}, {transform_indices = @transform_3, window_bounds = array<i64: 16, 16>}]} {
    %c0 = arith.constant 0 : index
    %c0_0 = arith.constant 0 : index
    %0 = vector.load %arg1[%c0, %c0_0] : memref<16x32xf32, #tpu.memory_space<vmem>>, vector<16x32xf32>
    %c0_1 = arith.constant 0 : index
    %c0_2 = arith.constant 0 : index
    %1 = vector.load %arg2[%c0_1, %c0_2] : memref<32x8xf32, #tpu.memory_space<vmem>>, vector<32x8xf32>
    %cst = arith.constant dense<0.000000e+00> : vector<16x8xf32>
    %2 = tpu.matmul %0, %1, %cst {dimension_numbers = #tpu.dot_dimension_numbers<[1], [0], [0], [1], [0, 0, 1, 1], [], []>} : vector<16x32xf32>, vector<32x8xf32>, vector<16x8xf32> -> vector<16x8xf32>
    %c0_3 = arith.constant 0 : index
    %c0_4 = arith.constant 0 : index
    %3 = vector.load %arg3[%c0_3, %c0_4] : memref<8x16xf32, #tpu.memory_space<vmem>>, vector<8x16xf32>
    %cst_5 = arith.constant dense<0.000000e+00> : vector<16x16xf32>
    %4 = tpu.matmul %2, %3, %cst_5 {dimension_numbers = #tpu.dot_dimension_numbers<[1], [0], [0], [1], [0, 0, 1, 1], [], []>} : vector<16x8xf32>, vector<8x16xf32>, vector<16x16xf32> -> vector<16x16xf32>
    %cst_6 = arith.constant 4.000000e+00 : f32
    %5 = vector.broadcast %cst_6 : f32 to vector<16x16xf32>
    %6 = arith.mulf %4, %5 : vector<16x16xf32>
    %c0_7 = arith.constant 0 : index
    %c0_8 = arith.constant 0 : index
    %7 = vector.load %arg4[%c0_7, %c0_8] : memref<16x16xf32, #tpu.memory_space<vmem>>, vector<16x16xf32>
    tpu.vector_store %arg4[%c0_7, %c0_8], %6 {strides = array<i32>} : memref<16x16xf32, #tpu.memory_space<vmem>>, vector<16x16xf32>,
    return
  }
  func.func @transform_0(%arg0: i32) -> (i32, i32) {
    %c0_i32 = arith.constant 0 : i32
    %c0_i32_0 = arith.constant 0 : i32
    return %arg0, %c0_i32 : i32, i32
  }
  func.func @transform_1(%arg0: i32) -> (i32, i32) {
    %c0_i32 = arith.constant 0 : i32
    %c0_i32_0 = arith.constant 0 : i32
    %c0_i32_1 = arith.constant 0 : i32
    return %c0_i32, %c0_i32_0 : i32, i32
  }
  func.func @transform_2(%arg0: i32) -> (i32, i32) {
    %c0_i32 = arith.constant 0 : i32
    %c0_i32_0 = arith.constant 0 : i32
    %c0_i32_1 = arith.constant 0 : i32
    return %c0_i32, %c0_i32_0 : i32, i32
  }
  func.func @transform_3(%arg0: i32) -> (i32, i32) {
    %c0_i32 = arith.constant 0 : i32
    %c0_i32_0 = arith.constant 0 : i32
    return %arg0, %c0_i32 : i32, i32
  }
}

</mosaic_0001>

<bundles_post_ra>
// kernel: tpu_custom_call.1
= control target key start
LH: loop header
LB: loop body
LE: loop exit
PB: predicated region body
PF: predicated region fallthrough
CT: control target
= control target key end

     0   :  { %vm21_vm0 = vcmask 261120   ;;  %s327_s0 = inlined_call_operand.vmem [shape: f32[16,32], index: 0, kind: input, shape index: {}]   ;;  %s328_s1 = inlined_call_operand.vmem [shape: f32[32,8], index: 1, kind: input, shape index: {}]   ;;  %s329_s2 = inlined_call_operand.vmem [shape: f32[8,16], index: 2, kind: input, shape index: {}]   ;;  %s330_s3 = inlined_call_operand.hbm [shape: f32[16,16], index: 3, kind: output, shape index: {}]  }
   0x1   :  { %v17_v0 = vld [vmem:[%s328_s1] sm:$0xff]  ;;  %v18_v1 = vld [vmem:[%s328_s1 + $0x8] sm:$0xff]  ;;  %v19_v2 = vld [vmem:[%s328_s1 + $0x10] sm:$0xff] }
   0x2   :  { %v236_v3 = vpack.c.bf16 %v18_v1, %v17_v0  ;;  %v20_v4 = vld [vmem:[%s328_s1 + $0x18] sm:$0xff]  ;;  %v15_v5 = vld [vmem:[%s327_s0] sm:$0xff] }
   0x3   :  { %v240_v6 = vpack.c.bf16 %v20_v4, %v19_v2  ;;  %228 = vmatprep.mubr.msk.f32.mxu0 %vm21_vm0, %v15_v5 }
   0x4   :  { %8 = vsyncpa [#allocation3], 0  ;;  %237 = vmatprep.subr.bf16.mxu0 %v236_v3  ;;  %v16_v7 = vld [vmem:[%s327_s0 + $0x8] sm:$0xff]  ;;  %v103_v8 = vld [vmem:[%s329_s2] sm:$0xff]  ;;  %vm104_vm1 = vcmask 64512   ;;  %s271_s1 = smov [#allocation2]  }
   0x5   :  { %239 = vmatpush3.bf16.msra.mxu0 %v236_v3  ;;  %231 = vmatprep.subr.mxu1 %v103_v8  ;;  %s196_s26 = sshll.u32 %s271_s1, 4  ;;  %vm188_vm2 = vcmask 130048   ;;  %s197_s26 = int_to_ptr.vmem [resolvable:$true] %s196_s26 }
   0x6   :  { %241 = vmatprep.subr.bf16.mxu0 %v240_v6  ;;  %232 = vmatpush3.msra.mxu1 %v103_v8  ;;  %s247_s0 = scalar_lea.vmem %s197_s26, 256  ;;  %p252_p1 = scmp.lt.s32.totalorder %s197_s26, %s197_s26 }
   0x7   :  { %p248_p0 = scmp.ne.s32.totalorder %s197_s26, %s247_s0  ;;  %p253_p2 = scmp.lt.s32.totalorder %s247_s0, %s247_s0 }
   0x9   :  { %243 = vmatpush3.bf16.msra.mxu0 %v240_v6  ;;  %p254_p3 = por %p253_p2, %p252_p1 }
   0xb   :  { %p255_p4 = pnand %p254_p3, %p248_p0 }
   0xc   :  { %229 = vmatmul.mubr.msk.f32.vlgmr.msra.gmra.mrb[0].mxu0 %vm21_vm0, %v16_v7 }
  0xdf   :  { %v230_v9 = vpop.f32.mrb[0].mxu0 }
  0xe0   :  { %v94_v10 = vpop.f32.mrb[1].mxu0 }
  0xe1   :  { %233 = vmatprep.mubr.msk.f32.mxu1 %vm104_vm1, %v94_v10 }
  0xe2   :  { %234 = vmatmul.mubr.msk.f32.vlgmr.msra.gmra.mrb[0].mxu1 %vm104_vm1, %v230_v9 }
 0x1b5   :  { %v235_v11 = vpop.f32.mrb[0].mxu1 }
 0x1b6   :  { %v187_v12 = vmul.f32 4.0, %v235_v11  ;;  %v177_v13 = vpop.f32.mrb[1].mxu1 }
 0x1b7   :  { %v186_v14 = vmul.f32 4.0, %v177_v13 }
 0x1b8   :  { %190 = vst.msk [vmem:[#allocation2 + $0x8] sm:$0xff] %vm188_vm2, %v187_v12 }
 0x1b9   :  { %189 = vst.msk [vmem:[#allocation2] sm:$0xff] %vm188_vm2, %v186_v14 }
 0x1ba   :  { %258 = shalt.err (!%p255_p4)
}
 0x1bb   :  { %s259_s28 = scalar_lea.hbm %s330_s3, 256 }
 0x1bc   :  { %p260_p5 = scmp.ne.s32.totalorder %s330_s3, %s259_s28  ;;  %p263_p6 = scmp.lt.u32.totalorder %s259_s28, %s330_s3 }
 0x1be   :  { %p265_p7 = pnand %p263_p6, %p260_p5 }
 0x1c0   :  { %268 = shalt.err (!%p265_p7)
}
 0x1c1   :  { %s272_s6 = smov 128   ;;  %s273_s7 = smov 8  }
 0x1c2   :  { %202 = dma.vmem_to_hbm [thread:$0]  %s197_s26, 256, %s330_s3, [#allocation3], %s272_s6, %s272_s6, %s273_s7  }
 0x1c3   :  { %269 = dma.done.wait [#allocation3], 256  }
 0x1c4   :  { %270 = vsyncadd [#allocation3], 4294967040 }
 0x1c5   :  { %206 = vsyncpa [#allocation3], 1 }

</bundles_post_ra>
